<compile_context>
chip_gen: v7x
topology: tpu7x:2x2x1
jax: 0.10.0
libtpu: 0.0.40
codegen_flags: <defaults>
</compile_context>

<pallas_src>
import jax
import jax.numpy as jnp
from jax.experimental import pallas as pl
from jax.experimental.pallas import tpu as pltpu

NMF_ITERS = 5
K_PAD = 128            # concept axis padded to one lane width (n_concepts <= 128)
TK_MAX = 2048          # Din-contraction chunk (keeps per-step VMEM bounded)


def _tpu_generation():
    """Best-effort TPU generation sniff (falls back to v6-class defaults)."""
    try:
        kind = jax.devices()[0].device_kind.lower()
    except Exception:
        return 6
    for g in (7, 6, 5, 4, 3, 2):
        if "v{}".format(g) in kind:
            return g
    return 6


def _craft_kernel(patches_ref, w_embed_ref, b_embed_ref, w_nmf_t_ref, wwt_ref,
                  u_ref, acc_ref):
    """One (patch tile, Din chunk) step: accumulate embed; on the last Din
    chunk run ReLU + fixed-W NMF multiplicative updates and store U."""
    # patches_ref : (TP, TK)        bf16  flattened image patches (zero padded)
    # w_embed_ref : (TK, F)         bf16  synthetic "g + mean-pool" projection
    # b_embed_ref : (1, F)          f32
    # w_nmf_t_ref : (F, K_pad)      bf16  concept bank, pre-transposed (W^T)
    # wwt_ref     : (K_pad, K_pad)  bf16  precomputed W W^T
    # u_ref       : (TP, K_pad)     bf16  concept coefficients U (lane-dense)
    # acc_ref     : (TP, F)         f32   embed accumulator (scratch)
    k = pl.program_id(1)

    @pl.when(k == 0)
    def _():
        acc_ref[...] = jnp.zeros_like(acc_ref)

    acc_ref[...] += jnp.dot(patches_ref[...], w_embed_ref[...],
                            preferred_element_type=jnp.float32)

    @pl.when(k == pl.num_programs(1) - 1)
    def _():
        a = jnp.maximum(acc_ref[...] + b_embed_ref[...], 0.0)       # (TP, F)

        # numer = A @ W^T ; W pre-transposed on the host (no in-kernel XLU
        # transpose) and W W^T not recomputed per tile.
        numer = jnp.dot(a.astype(jnp.bfloat16), w_nmf_t_ref[...],
                        preferred_element_type=jnp.float32)         # (TP, K)

        # NMF (fixed W): multiplicative updates  U <- U * (A W^T) / (U W W^T)
        # numer = ReLU(A) @ W^T with W >= 0  =>  already non-negative.
        # Denominator matmul runs bf16 x bf16 on the MXU (f32 accumulate).
        wwt = wwt_ref[...]                                           # bf16
        eps = jnp.float32(1e-6)
        u = numer
        for _ in range(NMF_ITERS):
            denom = jnp.dot(u.astype(jnp.bfloat16), wwt,
                            preferred_element_type=jnp.float32) + eps
            # TODO(synk): f32 EUP reciprocal kept for portability (v5e EUP has
            # no bf16 path); revisit bf16 recip on v6e/v7x if EUP-bound.
            u = u * numer * pl.reciprocal(denom, approx=True)

        u_ref[...] = u.astype(u_ref.dtype)


def _run_craft_pallas(patches_pad, w_embed, b_embed, w_nmf_t, wwt, tp, tk):
    P_pad, Din_pad = patches_pad.shape
    _, feat = w_embed.shape
    k_pad = w_nmf_t.shape[1]
    n_k = Din_pad // tk

    gen = _tpu_generation()
    if gen >= 7:
        vmem_limit = 48 * 1024 * 1024      # v7x: 64 MiB/TC physical, keep headroom
    elif gen in (5, 6):
        vmem_limit = 96 * 1024 * 1024      # v5e/v6e: 128 MiB physical
    else:
        vmem_limit = 32 * 1024 * 1024      # unknown/older: conservative

    resident = pl.Buffered(1)              # constant-index inputs: no double buffer

    return pl.pallas_call(
        _craft_kernel,
        grid=(P_pad // tp, n_k),
        in_specs=[
            pl.BlockSpec((tp, tk), lambda i, k: (i, k)),            # tiled patches
            pl.BlockSpec((tk, feat), lambda i, k: (k, 0)),          # embed chunk
            pl.BlockSpec((1, feat), lambda i, k: (0, 0),
                         pipeline_mode=resident),                   # resident bias
            pl.BlockSpec((feat, k_pad), lambda i, k: (0, 0),
                         pipeline_mode=resident),                   # resident W^T
            pl.BlockSpec((k_pad, k_pad), lambda i, k: (0, 0),
                         pipeline_mode=resident),                   # resident W W^T
        ],
        out_specs=pl.BlockSpec((tp, k_pad), lambda i, k: (i, 0)),
        out_shape=jax.ShapeDtypeStruct((P_pad, k_pad), jnp.bfloat16),
        scratch_shapes=[pltpu.VMEM((tp, feat), jnp.float32)],
        compiler_params=pltpu.CompilerParams(
            dimension_semantics=("parallel", "arbitrary"),
            vmem_limit_bytes=vmem_limit,
        ),
    )(patches_pad, w_embed, b_embed, w_nmf_t, wwt)


def craft_groups_forward(x, *, max_groups=16, number_of_concepts=10,
                         feat_dim=128, seed=0):
    x = x.astype(jnp.float32)
    N, C, H, W = x.shape
    if C == 1:
        x = jnp.tile(x, (1, 3, 1, 1))
        C = 3

    d = min(H, W)
    patch_size = int(d // 5)

    # shrink to (d, d)  # TODO(synk): torchvision Resize antialias not reproduced
    x_shrunk = jax.image.resize(x, (N, C, d, d), method="bilinear")

    # non-overlapping patch extraction (stride == patch_size), (C, kh, kw) order
    nps = d // patch_size
    n_patches = nps * nps
    ps = patch_size
    xp = x_shrunk[:, :, :nps * ps, :nps * ps]
    patches = xp.reshape(N, C, nps, ps, nps, ps)
    patches = patches.transpose(0, 2, 4, 1, 3, 5).reshape(N * n_patches,
                                                          C * ps * ps)

    Din = C * ps * ps
    P_total = N * n_patches
    assert number_of_concepts <= K_PAD

    # feature-axis padding / Din-contraction chunk
    Din_pad = max(128, ((Din + 127) // 128) * 128)
    if Din_pad <= TK_MAX:
        tk = Din_pad
    else:
        Din_pad = ((Din_pad + TK_MAX - 1) // TK_MAX) * TK_MAX
        tk = TK_MAX

    # patch-axis tile: generation aware (v7x keeps a smaller per-step footprint
    # and more grid steps for 2-TC load balance); pad P so the grid divides.
    gen = _tpu_generation()
    max_tp = 1024 if gen in (5, 6) else 512
    p8 = ((P_total + 7) // 8) * 8
    tp = min(max_tp, p8)
    P_pad = ((P_total + tp - 1) // tp) * tp

    # build the padded patch slab directly in bf16 (half the HBM traffic, no
    # separate full-array convert)
    patches_pad = jnp.zeros((P_pad, Din_pad), jnp.bfloat16)
    patches_pad = patches_pad.at[:P_total, :Din].set(
        patches.astype(jnp.bfloat16))

    # deterministic synthetic parameters (replace pretrained backbone / NMF fit)
    # TODO(synk): pretrained nf_resnet50 stem and sklearn NMF have no in-script
    # equivalent; replaced by deterministic synthetic weights (same dataflow).
    k1, k2, k3 = jax.random.split(jax.random.PRNGKey(seed), 3)
    w_embed = jnp.zeros((Din_pad, feat_dim), jnp.bfloat16)
    w_embed = w_embed.at[:Din].set(
        (0.05 * jax.random.normal(k1, (Din, feat_dim))).astype(jnp.bfloat16))
    b_embed = 0.01 * jax.random.normal(k2, (1, feat_dim), jnp.float32)
    w_nmf = jnp.zeros((K_PAD, feat_dim), jnp.float32)
    w_nmf = w_nmf.at[:number_of_concepts].set(
        0.1 * jnp.abs(jax.random.normal(k3, (number_of_concepts, feat_dim))))

    # Host-side precompute: W^T (kills the in-kernel XLU transpose) and W W^T
    # (would otherwise be recomputed on every patch tile).  Both bf16.
    w_nmf_t = w_nmf.T.astype(jnp.bfloat16)              # (feat, K_pad)
    wwt = (w_nmf @ w_nmf.T).astype(jnp.bfloat16)        # (K_pad, K_pad)

    u_pad = _run_craft_pallas(patches_pad, w_embed, b_embed, w_nmf_t, wwt,
                              tp, tk)

    # rowmax / top-k on the small (N, n_patches, K) U slab in XLA — keeps the
    # kernel output lane-dense instead of a (P,1) masked-store column.
    u = u_pad[:P_total, :number_of_concepts].astype(jnp.float32)
    u = u.reshape(N, n_patches, number_of_concepts)
    rowmax = jnp.max(u, axis=-1)                                     # (N, P)
    # ascending argsort, exactly as the module: U.max(-1).values.argsort()[:, :G]
    g_out = min(max_groups, n_patches)   # guard n_patches < max_groups edge case
    topks = jnp.argsort(rowmax, axis=-1)[:, :g_out]                  # (N, G)

    # per-patch binary location masks over the shrunk image (same for all imgs)
    pr = jnp.arange(d) // ps
    valid = jnp.arange(d) < nps * ps
    patch_of_pixel = pr[:, None] * nps + pr[None, :]                 # (d, d)
    masks = ((jnp.arange(n_patches)[:, None, None] == patch_of_pixel[None])
             & valid[None, :, None] & valid[None, None, :]).astype(jnp.int32)

    selected_masks = masks[topks]                                    # (N,G,d,d)

    # grow back to (H, W); masks are blocky/binary -> nearest-neighbor resize
    # (PyTorch returns int64; JAX x64 disabled by default, so int32 here)
    grown = jax.image.resize(selected_masks.astype(jnp.float32),
                             (N, g_out, H, W), method="nearest")
    return grown.astype(jnp.int32)


if __name__ == "__main__":
    key = jax.random.PRNGKey(0)
    x = jax.random.uniform(key, (2, 3, 20, 28), jnp.float32)         # N, C, H, W
    out = craft_groups_forward(x, max_groups=16, number_of_concepts=10)
    out = jax.block_until_ready(out)
    assert out.shape == (2, 16, 20, 28), out.shape
    assert out.dtype == jnp.int32
    print("KERNEL_OK")
</pallas_src>

<mosaic_0001>
module attributes {stable_mosaic.version = 11 : i64} {
  func.func @_craft_kernel(%arg0: i32, %arg1: i32, %arg2: memref<56x128xbf16, #tpu.memory_space<vmem>>, %arg3: memref<128x128xbf16, #tpu.memory_space<vmem>>, %arg4: memref<1x128xf32, #tpu.memory_space<vmem>>, %arg5: memref<128x128xbf16, #tpu.memory_space<vmem>>, %arg6: memref<128x128xbf16, #tpu.memory_space<vmem>>, %arg7: memref<56x128xbf16, #tpu.memory_space<vmem>>, %arg8: memref<56x128xf32, #tpu.memory_space<vmem>>) attributes {dimension_semantics = [#tpu.dimension_semantics<parallel>, #tpu.dimension_semantics<arbitrary>], iteration_bounds = array<i64: 1, 1>, scalar_prefetch = 0 : i64, scratch_operands = 1 : i64, tpu.core_type = #tpu.core_type<tc>, window_params = [{transform_indices = @transform_0, window_bounds = array<i64: 56, 128>}, {transform_indices = @transform_1, window_bounds = array<i64: 128, 128>}, {pipeline_mode = #tpu.pipeline_mode<synchronous>, transform_indices = @transform_2, window_bounds = array<i64: 1, 128>}, {pipeline_mode = #tpu.pipeline_mode<synchronous>, transform_indices = @transform_3, window_bounds = array<i64: 128, 128>}, {pipeline_mode = #tpu.pipeline_mode<synchronous>, transform_indices = @transform_4, window_bounds = array<i64: 128, 128>}, {transform_indices = @transform_5, window_bounds = array<i64: 56, 128>}]} {
    %c0_i32 = arith.constant 0 : i32
    %0 = arith.cmpi eq, %arg1, %c0_i32 : i32
    %1 = arith.extui %0 : i1 to i32
    %c0_i32_0 = arith.constant 0 : i32
    %2 = arith.cmpi ne, %1, %c0_i32_0 : i32
    scf.if %2 {
      %cst_10 = arith.constant 0.000000e+00 : f32
      %12 = vector.broadcast %cst_10 : f32 to vector<56x128xf32>
      %c0_11 = arith.constant 0 : index
      %c0_12 = arith.constant 0 : index
      %13 = vector.load %arg8[%c0_11, %c0_12] : memref<56x128xf32, #tpu.memory_space<vmem>>, vector<56x128xf32>
      tpu.vector_store %arg8[%c0_11, %c0_12], %12 {strides = array<i32>} : memref<56x128xf32, #tpu.memory_space<vmem>>, vector<56x128xf32>,
    } else {
    }
    %c0 = arith.constant 0 : index
    %c0_1 = arith.constant 0 : index
    %3 = vector.load %arg8[%c0, %c0_1] : memref<56x128xf32, #tpu.memory_space<vmem>>, vector<56x128xf32>
    %c0_2 = arith.constant 0 : index
    %c0_3 = arith.constant 0 : index
    %4 = vector.load %arg2[%c0_2, %c0_3] : memref<56x128xbf16, #tpu.memory_space<vmem>>, vector<56x128xbf16>
    %c0_4 = arith.constant 0 : index
    %c0_5 = arith.constant 0 : index
    %5 = vector.load %arg3[%c0_4, %c0_5] : memref<128x128xbf16, #tpu.memory_space<vmem>>, vector<128x128xbf16>
    %cst = arith.constant dense<0.000000e+00> : vector<56x128xf32>
    %6 = tpu.matmul %4, %5, %cst {dimension_numbers = #tpu.dot_dimension_numbers<[1], [0], [0], [1], [0, 0, 1, 1], [], []>} : vector<56x128xbf16>, vector<128x128xbf16>, vector<56x128xf32> -> vector<56x128xf32>
    %7 = arith.addf %3, %6 : vector<56x128xf32>
    %c0_6 = arith.constant 0 : index
    %c0_7 = arith.constant 0 : index
    %8 = vector.load %arg8[%c0_6, %c0_7] : memref<56x128xf32, #tpu.memory_space<vmem>>, vector<56x128xf32>
    tpu.vector_store %arg8[%c0_6, %c0_7], %7 {strides = array<i32>} : memref<56x128xf32, #tpu.memory_space<vmem>>, vector<56x128xf32>,
    %c0_i32_8 = arith.constant 0 : i32
    %9 = arith.cmpi eq, %arg1, %c0_i32_8 : i32
    %10 = arith.extui %9 : i1 to i32
    %c0_i32_9 = arith.constant 0 : i32
    %11 = arith.cmpi ne, %10, %c0_i32_9 : i32
    scf.if %11 {
      %c0_10 = arith.constant 0 : index
      %c0_11 = arith.constant 0 : index
      %12 = vector.load %arg8[%c0_10, %c0_11] : memref<56x128xf32, #tpu.memory_space<vmem>>, vector<56x128xf32>
      %c0_12 = arith.constant 0 : index
      %c0_13 = arith.constant 0 : index
      %13 = vector.load %arg4[%c0_12, %c0_13] : memref<1x128xf32, #tpu.memory_space<vmem>>, vector<1x128xf32>
      %14 = vector.broadcast %13 : vector<1x128xf32> to vector<56x128xf32>
      %15 = arith.addf %12, %14 : vector<56x128xf32>
      %cst_14 = arith.constant 0.000000e+00 : f32
      %16 = vector.broadcast %cst_14 : f32 to vector<56x128xf32>
      %17 = arith.maximumf %15, %16 : vector<56x128xf32>
      %18 = arith.truncf %17 : vector<56x128xf32> to vector<56x128xbf16>
      %c0_15 = arith.constant 0 : index
      %c0_16 = arith.constant 0 : index
      %19 = vector.load %arg5[%c0_15, %c0_16] : memref<128x128xbf16, #tpu.memory_space<vmem>>, vector<128x128xbf16>
      %cst_17 = arith.constant dense<0.000000e+00> : vector<56x128xf32>
      %20 = tpu.matmul %18, %19, %cst_17 {dimension_numbers = #tpu.dot_dimension_numbers<[1], [0], [0], [1], [0, 0, 1, 1], [], []>} : vector<56x128xbf16>, vector<128x128xbf16>, vector<56x128xf32> -> vector<56x128xf32>
      %c0_18 = arith.constant 0 : index
      %c0_19 = arith.constant 0 : index
      %21 = vector.load %arg6[%c0_18, %c0_19] : memref<128x128xbf16, #tpu.memory_space<vmem>>, vector<128x128xbf16>
      %22 = arith.truncf %20 : vector<56x128xf32> to vector<56x128xbf16>
      %cst_20 = arith.constant dense<0.000000e+00> : vector<56x128xf32>
      %23 = tpu.matmul %22, %21, %cst_20 {dimension_numbers = #tpu.dot_dimension_numbers<[1], [0], [0], [1], [0, 0, 1, 1], [], []>} : vector<56x128xbf16>, vector<128x128xbf16>, vector<56x128xf32> -> vector<56x128xf32>
      %cst_21 = arith.constant 9.99999997E-7 : f32
      %24 = vector.broadcast %cst_21 : f32 to vector<56x128xf32>
      %25 = arith.addf %23, %24 : vector<56x128xf32>
      %26 = arith.mulf %20, %20 : vector<56x128xf32>
      %27 = tpu.reciprocal %25 {approx = true} : vector<56x128xf32> -> vector<56x128xf32>
      %28 = arith.mulf %26, %27 : vector<56x128xf32>
      %29 = arith.truncf %28 : vector<56x128xf32> to vector<56x128xbf16>
      %cst_22 = arith.constant dense<0.000000e+00> : vector<56x128xf32>
      %30 = tpu.matmul %29, %21, %cst_22 {dimension_numbers = #tpu.dot_dimension_numbers<[1], [0], [0], [1], [0, 0, 1, 1], [], []>} : vector<56x128xbf16>, vector<128x128xbf16>, vector<56x128xf32> -> vector<56x128xf32>
      %cst_23 = arith.constant 9.99999997E-7 : f32
      %31 = vector.broadcast %cst_23 : f32 to vector<56x128xf32>
      %32 = arith.addf %30, %31 : vector<56x128xf32>
      %33 = arith.mulf %28, %20 : vector<56x128xf32>
      %34 = tpu.reciprocal %32 {approx = true} : vector<56x128xf32> -> vector<56x128xf32>
      %35 = arith.mulf %33, %34 : vector<56x128xf32>
      %36 = arith.truncf %35 : vector<56x128xf32> to vector<56x128xbf16>
      %cst_24 = arith.constant dense<0.000000e+00> : vector<56x128xf32>
      %37 = tpu.matmul %36, %21, %cst_24 {dimension_numbers = #tpu.dot_dimension_numbers<[1], [0], [0], [1], [0, 0, 1, 1], [], []>} : vector<56x128xbf16>, vector<128x128xbf16>, vector<56x128xf32> -> vector<56x128xf32>
      %cst_25 = arith.constant 9.99999997E-7 : f32
      %38 = vector.broadcast %cst_25 : f32 to vector<56x128xf32>
      %39 = arith.addf %37, %38 : vector<56x128xf32>
      %40 = arith.mulf %35, %20 : vector<56x128xf32>
      %41 = tpu.reciprocal %39 {approx = true} : vector<56x128xf32> -> vector<56x128xf32>
      %42 = arith.mulf %40, %41 : vector<56x128xf32>
      %43 = arith.truncf %42 : vector<56x128xf32> to vector<56x128xbf16>
      %cst_26 = arith.constant dense<0.000000e+00> : vector<56x128xf32>
      %44 = tpu.matmul %43, %21, %cst_26 {dimension_numbers = #tpu.dot_dimension_numbers<[1], [0], [0], [1], [0, 0, 1, 1], [], []>} : vector<56x128xbf16>, vector<128x128xbf16>, vector<56x128xf32> -> vector<56x128xf32>
      %cst_27 = arith.constant 9.99999997E-7 : f32
      %45 = vector.broadcast %cst_27 : f32 to vector<56x128xf32>
      %46 = arith.addf %44, %45 : vector<56x128xf32>
      %47 = arith.mulf %42, %20 : vector<56x128xf32>
      %48 = tpu.reciprocal %46 {approx = true} : vector<56x128xf32> -> vector<56x128xf32>
      %49 = arith.mulf %47, %48 : vector<56x128xf32>
      %50 = arith.truncf %49 : vector<56x128xf32> to vector<56x128xbf16>
      %cst_28 = arith.constant dense<0.000000e+00> : vector<56x128xf32>
      %51 = tpu.matmul %50, %21, %cst_28 {dimension_numbers = #tpu.dot_dimension_numbers<[1], [0], [0], [1], [0, 0, 1, 1], [], []>} : vector<56x128xbf16>, vector<128x128xbf16>, vector<56x128xf32> -> vector<56x128xf32>
      %cst_29 = arith.constant 9.99999997E-7 : f32
      %52 = vector.broadcast %cst_29 : f32 to vector<56x128xf32>
      %53 = arith.addf %51, %52 : vector<56x128xf32>
      %54 = arith.mulf %49, %20 : vector<56x128xf32>
      %55 = tpu.reciprocal %53 {approx = true} : vector<56x128xf32> -> vector<56x128xf32>
      %56 = arith.mulf %54, %55 : vector<56x128xf32>
      %57 = arith.truncf %56 : vector<56x128xf32> to vector<56x128xbf16>
      %c0_30 = arith.constant 0 : index
      %c0_31 = arith.constant 0 : index
      %58 = vector.load %arg7[%c0_30, %c0_31] : memref<56x128xbf16, #tpu.memory_space<vmem>>, vector<56x128xbf16>
      tpu.vector_store %arg7[%c0_30, %c0_31], %57 {strides = array<i32>} : memref<56x128xbf16, #tpu.memory_space<vmem>>, vector<56x128xbf16>,
    } else {
    }
    return
  }
  func.func @transform_0(%arg0: i32, %arg1: i32) -> (i32, i32) {
    %c0_i32 = arith.constant 0 : i32
    return %arg0, %arg1 : i32, i32
  }
  func.func @transform_1(%arg0: i32, %arg1: i32) -> (i32, i32) {
    %c0_i32 = arith.constant 0 : i32
    %c0_i32_0 = arith.constant 0 : i32
    return %arg1, %c0_i32 : i32, i32
  }
  func.func @transform_2(%arg0: i32, %arg1: i32) -> (i32, i32) {
    %c0_i32 = arith.constant 0 : i32
    %c0_i32_0 = arith.constant 0 : i32
    %c0_i32_1 = arith.constant 0 : i32
    return %c0_i32, %c0_i32_0 : i32, i32
  }
  func.func @transform_3(%arg0: i32, %arg1: i32) -> (i32, i32) {
    %c0_i32 = arith.constant 0 : i32
    %c0_i32_0 = arith.constant 0 : i32
    %c0_i32_1 = arith.constant 0 : i32
    return %c0_i32, %c0_i32_0 : i32, i32
  }
  func.func @transform_4(%arg0: i32, %arg1: i32) -> (i32, i32) {
    %c0_i32 = arith.constant 0 : i32
    %c0_i32_0 = arith.constant 0 : i32
    %c0_i32_1 = arith.constant 0 : i32
    return %c0_i32, %c0_i32_0 : i32, i32
  }
  func.func @transform_5(%arg0: i32, %arg1: i32) -> (i32, i32) {
    %c0_i32 = arith.constant 0 : i32
    %c0_i32_0 = arith.constant 0 : i32
    return %arg0, %c0_i32 : i32, i32
  }
}

</mosaic_0001>

<bundles_post_ra>
// kernel: tpu_custom_call.1
= control target key start
LH: loop header
LB: loop body
LE: loop exit
PB: predicated region body
PF: predicated region fallthrough
CT: control target
= control target key end

     0   :  { %10 = vsyncpa [#allocation4], 0  ;;  %s1907_s0 = inlined_call_operand.hbm [shape: bf16[56,128], index: 0, kind: input, shape index: {}]   ;;  %s1908_s1 = inlined_call_operand.hbm [shape: bf16[128,128], index: 1, kind: input, shape index: {}]   ;;  %s1909_s2 = inlined_call_operand.hbm [shape: f32[1,128], index: 2, kind: input, shape index: {}]   ;;  %s1910_s3 = inlined_call_operand.hbm [shape: bf16[128,128], index: 3, kind: input, shape index: {}]   ;;  %s1911_s4 = inlined_call_operand.hbm [shape: bf16[128,128], index: 4, kind: input, shape index: {}]   ;;  %s1912_s5 = inlined_call_operand.hbm [shape: bf16[56,128], index: 5, kind: output, shape index: {}]  }
   0x1   :  { %11 = vsyncpa [#allocation7], 0 }
   0x2   :  { %12 = vsyncpa [#allocation10], 0 }
   0x3   :  { %13 = vsyncpa [#allocation5], 0  ;;  %s1578_s18 = smov [#allocation6]   ;;  %s1579_s20 = smov [#allocation9]  }
   0x4   :  { %s31_s19 = sshll.u32 %s1578_s18, 4  ;;  %s53_s21 = sshll.u32 %s1579_s20, 4  ;;  %s32_s19 = int_to_ptr.vmem [resolvable:$true] %s31_s19  ;;  %s1616_s21 = int_to_ptr.vmem [resolvable:$true] %s53_s21 }
   0x5   :  { %s1438_s24 = scalar_lea.hbm %s1908_s1, 1024 }
   0x6   :  { %p1439_p0 = scmp.ne.s32.totalorder %s1908_s1, %s1438_s24  ;;  %p1442_p1 = scmp.lt.u32.totalorder %s1438_s24, %s1908_s1 }
   0x8   :  { %p1444_p2 = pnand %p1442_p1, %p1439_p0 }
   0xa   :  { %1447 = shalt.err (!%p1444_p2)
}
   0xb   :  { %s1448_s29 = scalar_lea.vmem %s32_s19, 1024  ;;  %p1453_p4 = scmp.lt.s32.totalorder %s32_s19, %s32_s19 }
   0xc   :  { %p1449_p3 = scmp.ne.s32.totalorder %s32_s19, %s1448_s29  ;;  %p1454_p5 = scmp.lt.s32.totalorder %s1448_s29, %s1448_s29 }
   0xe   :  { %p1455_p6 = por %p1454_p5, %p1453_p4 }
  0x10   :  { %p1456_p7 = pnand %p1455_p6, %p1449_p3 }
  0x12   :  { %1459 = shalt.err (!%p1456_p7)
}
  0x13   :  { %s1580_s30 = smov 64   ;;  %s1581_s6 = smov 4  }
  0x14   :  { %37 = dma.hbm_to_vmem [thread:$0]  %s1908_s1, 1024, %s32_s19, [#allocation7], %s1580_s30, %s1580_s30, %s1581_s6  }
  0x15   :  { %s1460_s11 = scalar_lea.hbm %s1910_s3, 1024 }
  0x16   :  { %p1461_p8 = scmp.ne.s32.totalorder %s1910_s3, %s1460_s11  ;;  %p1464_p9 = scmp.lt.u32.totalorder %s1460_s11, %s1910_s3 }
  0x18   :  { %p1466_p10 = pnand %p1464_p9, %p1461_p8 }
  0x1a   :  { %1469 = shalt.err (!%p1466_p10)
}
  0x1b   :  { %s1470_s16 = scalar_lea.vmem %s1616_s21, 1024  ;;  %p1475_p12 = scmp.lt.s32.totalorder %s1616_s21, %s1616_s21 }
  0x1c   :  { %p1471_p11 = scmp.ne.s32.totalorder %s1616_s21, %s1470_s16  ;;  %p1476_p13 = scmp.lt.s32.totalorder %s1470_s16, %s1470_s16 }
  0x1e   :  { %p1477_p0 = por %p1476_p13, %p1475_p12 }
  0x20   :  { %p1478_p1 = pnand %p1477_p0, %p1471_p11 }
  0x22   :  { %1481 = shalt.err (!%p1478_p1)
}
  0x23   :  { %59 = dma.hbm_to_vmem [thread:$0]  %s1910_s3, 1024, %s1616_s21, [#allocation10], %s1580_s30, %s1580_s30, %s1581_s6  }
  0x24   :  { %s1582_s18 = smov [#allocation3]   ;;  %s1583_s20 = smov [#allocation8]  }
  0x25   :  { %s19_s19 = sshll.u32 %s1582_s18, 4  ;;  %s44_s22 = sshll.u32 %s1583_s20, 4  ;;  %s20_s19 = int_to_ptr.vmem [resolvable:$true] %s19_s19  ;;  %s45_s22 = int_to_ptr.vmem [resolvable:$true] %s44_s22 }
  0x26   :  { %s1482_s25 = scalar_lea.hbm %s1907_s0, 448 }
  0x27   :  { %p1483_p2 = scmp.ne.s32.totalorder %s1907_s0, %s1482_s25  ;;  %p1486_p3 = scmp.lt.u32.totalorder %s1482_s25, %s1907_s0 }
  0x29   :  { %p1488_p4 = pnand %p1486_p3, %p1483_p2 }
  0x2b   :  { %1491 = shalt.err (!%p1488_p4)
}
  0x2c   :  { %s1492_s3 = scalar_lea.vmem %s20_s19, 448  ;;  %p1497_p6 = scmp.lt.s32.totalorder %s20_s19, %s20_s19 }
  0x2d   :  { %p1493_p5 = scmp.ne.s32.totalorder %s20_s19, %s1492_s3  ;;  %p1498_p7 = scmp.lt.s32.totalorder %s1492_s3, %s1492_s3 }
  0x2f   :  { %p1499_p8 = por %p1498_p7, %p1497_p6 }
  0x31   :  { %p1500_p9 = pnand %p1499_p8, %p1493_p5 }
  0x33   :  { %1503 = shalt.err (!%p1500_p9)
}
  0x34   :  { %25 = dma.hbm_to_vmem [thread:$0]  %s1907_s0, 448, %s20_s19, [#allocation4], %s1580_s30, %s1580_s30, %s1581_s6  }
  0x35   :  { %s1504_s10 = scalar_lea.hbm %s1909_s2, 16 }
  0x36   :  { %p1505_p10 = scmp.ne.s32.totalorder %s1909_s2, %s1504_s10  ;;  %p1508_p11 = scmp.lt.u32.totalorder %s1504_s10, %s1909_s2 }
  0x38   :  { %p1510_p12 = pnand %p1508_p11, %p1505_p10 }
  0x3a   :  { %1513 = shalt.err (!%p1510_p12)
}
  0x3b   :  { %s1514_s15 = scalar_lea.vmem %s45_s22, 16  ;;  %s1518_s16 = scalar_lea.vmem %s45_s22, 32 }
  0x3c   :  { %p1515_p13 = scmp.ne.s32.totalorder %s45_s22, %s1514_s15  ;;  %p1519_p0 = scmp.lt.s32.totalorder %s45_s22, %s45_s22 }
  0x3d   :  { %p1520_p1 = scmp.lt.s32.totalorder %s1518_s16, %s1514_s15 }
  0x3f   :  { %p1521_p2 = por %p1520_p1, %p1519_p0 }
  0x41   :  { %p1522_p3 = pnand %p1521_p2, %p1515_p13 }
  0x43   :  { %1525 = shalt.err (!%p1522_p3)
}
  0x44   :  { %47 = dma.hbm_to_vmem [thread:$0]  %s1909_s2, 16, %s45_s22, [#allocation7]  }
  0x45   :  { %s1584_s17 = smov [#allocation11]   ;;  %s1526_s23 = scalar_lea.hbm %s1911_s4, 1024 }
  0x46   :  { %s65_s18 = sshll.u32 %s1584_s17, 4  ;;  %p1527_p4 = scmp.ne.s32.totalorder %s1911_s4, %s1526_s23  ;;  %s66_s18 = int_to_ptr.vmem [resolvable:$true] %s65_s18 }
  0x47   :  { %p1530_p5 = scmp.lt.u32.totalorder %s1526_s23, %s1911_s4 }
  0x49   :  { %p1532_p6 = pnand %p1530_p5, %p1527_p4 }
  0x4b   :  { %1535 = shalt.err (!%p1532_p6)
}
  0x4c   :  { %s1536_s28 = scalar_lea.vmem %s66_s18, 1024  ;;  %p1541_p8 = scmp.lt.s32.totalorder %s66_s18, %s66_s18 }
  0x4d   :  { %p1537_p7 = scmp.ne.s32.totalorder %s66_s18, %s1536_s28  ;;  %p1542_p9 = scmp.lt.s32.totalorder %s1536_s28, %s1536_s28 }
  0x4f   :  { %p1543_p10 = por %p1542_p9, %p1541_p8 }
  0x51   :  { %p1544_p11 = pnand %p1543_p10, %p1537_p7 }
  0x53   :  { %1547 = shalt.err (!%p1544_p11)
}
  0x54   :  { %71 = dma.hbm_to_vmem [thread:$0]  %s1911_s4, 1024, %s66_s18, [#allocation10], %s1580_s30, %s1580_s30, %s1581_s6  }
  0x55   :  { %1570 = dma.done.wait [#allocation4], 448  }
  0x56   :  { %1571 = vsyncadd [#allocation4], 4294966848 }
  0x57   :  { %1572 = dma.done.wait [#allocation7], 1040  }
  0x58   :  { %1573 = vsyncadd [#allocation7], 4294966256 }
  0x59   :  { %1574 = dma.done.wait [#allocation10], 2048  }
  0x5a   :  { %1575 = vsyncadd [#allocation10], 4294965248  ;;  %v1340_v0 = vld [vmem:[#allocation6] sm:$0xff]   ;;  %v1341_v1 = vld [vmem:[#allocation6 + $0x8] sm:$0xff]   ;;  %s1585_s4 = smov [#allocation12]  }
  0x5b   :  { %1148 = vmatprep.subr.bf16.mxu0 %v1340_v0  ;;  %v1342_v2 = vld [vmem:[#allocation6 + $0x10] sm:$0xff]   ;;  %v1343_v3 = vld [vmem:[#allocation6 + $0x18] sm:$0xff]   ;;  %v1348_v4 = vld [vmem:[#allocation3] sm:$0xff]   ;;  %s990_s29 = sshll.u32 %s1585_s4, 4  ;;  %s991_s29 = int_to_ptr.vmem [resolvable:$true] %s990_s29 }
  0x5c   :  { %1149 = vmatpush3.bf16.msra.mxu0 %v1340_v0  ;;  %1164 = vmatprep.mubr.bf16.mxu0 %v1348_v4  ;;  %v1344_v5 = vld [vmem:[#allocation6 + $0x20] sm:$0xff]   ;;  %v1353_v7 = vld [vmem:[#allocation9 + $0x8] sm:$0xff]   ;;  %v1354_v9 = vld [vmem:[#allocation9 + $0x10] sm:$0xff]   ;;  %s1548_s3 = scalar_lea.vmem %s991_s29, 448  ;;  %p1553_p13 = scmp.lt.s32.totalorder %s991_s29, %s991_s29 }
  0x5d   :  { %1150 = vmatprep.subr.bf16.mxu0 %v1341_v1  ;;  %v1352_v6 = vld [vmem:[#allocation9] sm:$0xff]   ;;  %v1346_v10 = vld [vmem:[#allocation6 + $0x30] sm:$0xff]   ;;  %v1355_v11 = vld [vmem:[#allocation9 + $0x18] sm:$0xff]   ;;  %p1549_p12 = scmp.ne.s32.totalorder %s991_s29, %s1548_s3  ;;  %p1554_p0 = scmp.lt.s32.totalorder %s1548_s3, %s1548_s3 }
  0x5e   :  { %1172 = vmatprep.subr.bf16.mxu1 %v1352_v6  ;;  %v1345_v8 = vld [vmem:[#allocation6 + $0x28] sm:$0xff]   ;;  %v1347_v12 = vld [vmem:[#allocation6 + $0x38] sm:$0xff]   ;;  %v1016_v27 = vld [vmem:[#allocation8] ss:$0 sm:$0xff] }
  0x5f   :  { %1173 = vmatpush3.bf16.msra.mxu1 %v1352_v6  ;;  %v1356_v13 = vld [vmem:[#allocation9 + $0x20] sm:$0xff]   ;;  %v1357_v14 = vld [vmem:[#allocation9 + $0x28] sm:$0xff]   ;;  %v1350_v16 = vld [vmem:[#allocation3 + $0x10] sm:$0xff]   ;;  %p1555_p1 = por %p1554_p0, %p1553_p13 }
  0x60   :  { %1151 = vmatpush3.bf16.msra.mxu0 %v1341_v1  ;;  %1174 = vmatprep.subr.bf16.mxu1 %v1353_v7  ;;  %v1349_v15 = vld [vmem:[#allocation3 + $0x8] sm:$0xff]   ;;  %v1351_v17 = vld [vmem:[#allocation3 + $0x18] ss:$0 sps:$4 sm:$0xff]   ;;  %v1695_v20 = vld [vmem:[#allocation11] sm:$0xff]  }
  0x61   :  { %1152 = vmatprep.subr.bf16.mxu0 %v1342_v2  ;;  %v1358_v18 = vld [vmem:[#allocation9 + $0x30] sm:$0xff]   ;;  %v1359_v19 = vld [vmem:[#allocation9 + $0x38] sm:$0xff]   ;;  %v1697_v21 = vld [vmem:[#allocation11 + $0x8] sm:$0xff]   ;;  %p1556_p2 = pnand %p1555_p1, %p1549_p12 }
  0x62   :  { %v1703_v22 = vld [vmem:[#allocation11 + $0x10] sm:$0xff]   ;;  %v1707_v23 = vld [vmem:[#allocation11 + $0x18] sm:$0xff]   ;;  %v1711_v24 = vld [vmem:[#allocation11 + $0x20] sm:$0xff]  }
  0x63   :  { %1175 = vmatpush3.bf16.msra.mxu1 %v1353_v7  ;;  %v1715_v25 = vld [vmem:[#allocation11 + $0x28] sm:$0xff]   ;;  %v1719_v26 = vld [vmem:[#allocation11 + $0x30] sm:$0xff]   ;;  %v1737_v54 = vld [vmem:[#allocation11 + $0x38] sm:$0xff]  }
  0x64   :  { %1153 = vmatpush3.bf16.msra.mxu0 %v1342_v2  ;;  %1176 = vmatprep.subr.bf16.mxu1 %v1354_v9 }
  0x65   :  { %1154 = vmatprep.subr.bf16.mxu0 %v1343_v3 }
  0x67   :  { %1177 = vmatpush3.bf16.msra.mxu1 %v1354_v9 }
  0x68   :  { %1155 = vmatpush3.bf16.msra.mxu0 %v1343_v3  ;;  %1178 = vmatprep.subr.bf16.mxu1 %v1355_v11 }
  0x69   :  { %1156 = vmatprep.subr.bf16.mxu0 %v1344_v5 }
  0x6b   :  { %1179 = vmatpush3.bf16.msra.mxu1 %v1355_v11 }
  0x6c   :  { %1157 = vmatpush3.bf16.msra.mxu0 %v1344_v5  ;;  %1180 = vmatprep.subr.bf16.mxu1 %v1356_v13 }
  0x6d   :  { %1158 = vmatprep.subr.bf16.mxu0 %v1345_v8 }
  0x6f   :  { %1181 = vmatpush3.bf16.msra.mxu1 %v1356_v13 }
  0x70   :  { %1159 = vmatpush3.bf16.msra.mxu0 %v1345_v8  ;;  %1182 = vmatprep.subr.bf16.mxu1 %v1357_v14 }
  0x71   :  { %1160 = vmatprep.subr.bf16.mxu0 %v1346_v10 }
  0x73   :  { %1183 = vmatpush3.bf16.msra.mxu1 %v1357_v14 }
  0x74   :  { %1161 = vmatpush3.bf16.msra.mxu0 %v1346_v10  ;;  %1184 = vmatprep.subr.bf16.mxu1 %v1358_v18 }
  0x75   :  { %1162 = vmatprep.subr.bf16.mxu0 %v1347_v12 }
  0x77   :  { %1185 = vmatpush3.bf16.msra.mxu1 %v1358_v18 }
  0x78   :  { %1163 = vmatpush3.bf16.msra.mxu0 %v1347_v12  ;;  %1186 = vmatprep.subr.bf16.mxu1 %v1359_v19 }
  0x79   :  { %1196 = vmatprep.subr.bf16.mxu0 %v1695_v20 }
  0x7b   :  { %1165 = vmatmul.mubr.bf16.vlgmr.msra.gmra.mrb[0].mxu0 %v1349_v15  ;;  %1187 = vmatpush3.bf16.msra.mxu1 %v1359_v19 }
  0x7c   :  { %1168 = vmatprep.mubr.bf16.mxu0 %v1350_v16  ;;  %1220 = vmatprep.subr.bf16.mxu1 %v1695_v20 }
  0x7d   :  { %1197 = vmatpush3.bf16.msra.mxu0 %v1695_v20 }
  0x7e   :  { %1198 = vmatprep.subr.bf16.mxu0 %v1697_v21 }
  0x81   :  { %1199 = vmatpush3.bf16.msra.mxu0 %v1697_v21 }
  0x82   :  { %1200 = vmatprep.subr.bf16.mxu0 %v1703_v22 }
  0x83   :  { %1169 = vmatmul.mubr.bf16.gmra.mrb[4].mxu0 %v1351_v17 }
  0x85   :  { %1201 = vmatpush3.bf16.msra.mxu0 %v1703_v22 }
  0x86   :  { %1202 = vmatprep.subr.bf16.mxu0 %v1707_v23 }
  0x89   :  { %1203 = vmatpush3.bf16.msra.mxu0 %v1707_v23 }
  0x8a   :  { %1204 = vmatprep.subr.bf16.mxu0 %v1711_v24 }
  0x8d   :  { %1205 = vmatpush3.bf16.msra.mxu0 %v1711_v24 }
  0x8e   :  { %1206 = vmatprep.subr.bf16.mxu0 %v1715_v25 }
  0x91   :  { %1207 = vmatpush3.bf16.msra.mxu0 %v1715_v25 }
  0x92   :  { %1208 = vmatprep.subr.bf16.mxu0 %v1719_v26 }
  0x95   :  { %1209 = vmatpush3.bf16.msra.mxu0 %v1719_v26 }
  0x96   :  { %1210 = vmatprep.subr.bf16.mxu0 %v1737_v54 }
  0x99   :  { %1211 = vmatpush3.bf16.msra.mxu0 %v1737_v54 }
  0x9a   :  { %1244 = vmatprep.subr.bf16.mxu0 %v1695_v20 }
 0x14e   :  { %v1166_v28 = vpop.f32.mrb[0].mxu0 }
 0x14f   :  { %v296_v29 = vadd.f32 %v1166_v28, %v1016_v27  ;;  %v233_v30 = vpop.f32.mrb[1].mxu0 }
 0x150   :  { %v294_v31 = vadd.f32 %v1016_v27, %v233_v30  ;;  %v1167_v32 = vpop.f32.mrb[2].mxu0 }
 0x151   :  { %v297_v33 = vadd.f32 %v1167_v32, %v1016_v27  ;;  %v236_v34 = vpop.f32.mrb[3].mxu0  ;;  %v303_v36 = vmax.f32 %v296_v29, 0.0 }
 0x152   :  { %v295_v35 = vadd.f32 %v1016_v27, %v236_v34  ;;  %v301_v38 = vmax.f32 %v294_v31, 0.0 }
 0x153   :  { %v304_v37 = vmax.f32 %v297_v33, 0.0 }
 0x154   :  { %v302_v39 = vmax.f32 %v295_v35, 0.0 }
 0x155   :  { %v309_v40 = vpack.c.bf16 %v304_v37, %v303_v36 }
 0x156   :  { %v1170_v41 = vpop.f32.mrb[4].mxu0  ;;  %v308_v42 = vpack.c.bf16 %v302_v39, %v301_v38 }
 0x157   :  { %v300_v43 = vadd.f32 %v1170_v41, %v1016_v27  ;;  %v249_v44 = vpop.f32.mrb[5].mxu0 }
 0x158   :  { %v298_v45 = vadd.f32 %v1016_v27, %v249_v44  ;;  %v1171_v46 = vpop.f32.mrb[6].mxu0  ;;  %1188 = vmatprep.mubr.bf16.mxu1 %v308_v42 }
 0x159   :  { %v252_v47 = vpop.f32.mrb[7].mxu0  ;;  %1189 = vmatmul.mubr.bf16.vlgmr.msra.gmra.mrb[0].mxu1 %v309_v40  ;;  %v307_v49 = vmax.f32 %v300_v43, 0.0 }
 0x15a   :  { %v299_v48 = vadd.f32 %v1016_v27, %v252_v47  ;;  %1221 = vmatpush3.bf16.msra.mxu1 %v1695_v20  ;;  %v305_v50 = vmax.f32 %v298_v45, 0.0 }
 0x15b   :  { %1222 = vmatprep.subr.bf16.mxu1 %v1697_v21  ;;  %v311_v53 = vpack.c.bf16 %v307_v49, %v307_v49 }
 0x15c   :  { %v306_v51 = vmax.f32 %v299_v48, 0.0 }
 0x15e   :  { %v310_v52 = vpack.c.bf16 %v306_v51, %v305_v50  ;;  %1223 = vmatpush3.bf16.msra.mxu1 %v1697_v21 }
 0x15f   :  { %1224 = vmatprep.subr.bf16.mxu1 %v1703_v22 }
 0x160   :  { %1192 = vmatprep.mubr.bf16.mxu1 %v310_v52 }
 0x161   :  { %1193 = vmatmul.mubr.bf16.gmra.mrb[4].mxu1 %v311_v53 }
 0x162   :  { %1225 = vmatpush3.bf16.msra.mxu1 %v1703_v22 }
 0x163   :  { %1226 = vmatprep.subr.bf16.mxu1 %v1707_v23 }
 0x166   :  { %1227 = vmatpush3.bf16.msra.mxu1 %v1707_v23 }
 0x167   :  { %1228 = vmatprep.subr.bf16.mxu1 %v1711_v24 }
 0x16a   :  { %1229 = vmatpush3.bf16.msra.mxu1 %v1711_v24 }
 0x16b   :  { %1230 = vmatprep.subr.bf16.mxu1 %v1715_v25 }
 0x16e   :  { %1231 = vmatpush3.bf16.msra.mxu1 %v1715_v25 }
 0x16f   :  { %1232 = vmatprep.subr.bf16.mxu1 %v1719_v26 }
 0x172   :  { %1233 = vmatpush3.bf16.msra.mxu1 %v1719_v26 }
 0x173   :  { %1234 = vmatprep.subr.bf16.mxu1 %v1737_v54 }
 0x176   :  { %1235 = vmatpush3.bf16.msra.mxu1 %v1737_v54 }
 0x177   :  { %1268 = vmatprep.subr.bf16.mxu1 %v1695_v20 }
 0x22c   :  { %v1745_v55 = vpop.f32.mrb[0].mxu1 }
 0x22d   :  { %v1747_v56 = vpop.f32.mrb[1].mxu1  ;;  %v574_v17 = vmul.f32 %v1745_v55, %v1745_v55 }
 0x22e   :  { %v1749_v57 = vpop.f32.mrb[2].mxu1  ;;  %v572_v27 = vmul.f32 %v1747_v56, %v1747_v56 }
 0x22f   :  { %v457_v58 = vpack.c.bf16 %v1749_v57, %v1745_v55  ;;  %v1753_v59 = vpop.f32.mrb[3].mxu1  ;;  %v575_v29 = vmul.f32 %v1749_v57, %v1749_v57 }
 0x230   :  { %v456_v60 = vpack.c.bf16 %v1753_v59, %v1747_v56  ;;  %v573_v32 = vmul.f32 %v1753_v59, %v1753_v59 }
 0x232   :  { %1212 = vmatprep.mubr.bf16.mxu0 %v456_v60 }
 0x233   :  { %1213 = vmatmul.mubr.bf16.vlgmr.msra.gmra.mrb[8].mxu0 %v457_v58 }
 0x234   :  { %v1757_v61 = vpop.f32.mrb[4].mxu1  ;;  %1245 = vmatpush3.bf16.msra.mxu0 %v1695_v20 }
 0x235   :  { %v1760_v62 = vpop.f32.mrb[5].mxu1  ;;  %1246 = vmatprep.subr.bf16.mxu0 %v1697_v21  ;;  %v459_v2 = vpack.c.bf16 %v1757_v61, %v1757_v61  ;;  %v578_v43 = vmul.f32 %v1757_v61, %v1757_v61 }
 0x236   :  { %v1195_v63 = vpop.f32.mrb[6].mxu1  ;;  %v576_v45 = vmul.f32 %v1760_v62, %v1760_v62 }
 0x237   :  { %v1763_v0 = vpop.f32.mrb[7].mxu1 }
 0x238   :  { %v458_v1 = vpack.c.bf16 %v1763_v0, %v1760_v62  ;;  %1247 = vmatpush3.bf16.msra.mxu0 %v1697_v21  ;;  %v577_v48 = vmul.f32 %v1763_v0, %v1763_v0 }
 0x239   :  { %1248 = vmatprep.subr.bf16.mxu0 %v1703_v22 }
 0x23a   :  { %1216 = vmatprep.mubr.bf16.mxu0 %v458_v1 }
 0x23b   :  { %1217 = vmatmul.mubr.bf16.gmra.mrb[12].mxu0 %v459_v2 }
 0x23c   :  { %1249 = vmatpush3.bf16.msra.mxu0 %v1703_v22 }
 0x23d   :  { %1250 = vmatprep.subr.bf16.mxu0 %v1707_v23 }
 0x240   :  { %1251 = vmatpush3.bf16.msra.mxu0 %v1707_v23 }
 0x241   :  { %1252 = vmatprep.subr.bf16.mxu0 %v1711_v24 }
 0x244   :  { %1253 = vmatpush3.bf16.msra.mxu0 %v1711_v24 }
 0x245   :  { %1254 = vmatprep.subr.bf16.mxu0 %v1715_v25 }
 0x248   :  { %1255 = vmatpush3.bf16.msra.mxu0 %v1715_v25 }
 0x249   :  { %1256 = vmatprep.subr.bf16.mxu0 %v1719_v26 }
 0x24c   :  { %1257 = vmatpush3.bf16.msra.mxu0 %v1719_v26 }
 0x24d   :  { %1258 = vmatprep.subr.bf16.mxu0 %v1737_v54 }
 0x250   :  { %1259 = vmatpush3.bf16.msra.mxu0 %v1737_v54 }
 0x251   :  { %1292 = vmatprep.subr.bf16.mxu0 %v1695_v20 }
 0x306   :  { %v1214_v3 = vpop.f32.mrb[8].mxu0 }
 0x307   :  { %v551_v4 = vadd.f32 1e-06, %v1214_v3  ;;  %v542_v5 = vpop.f32.mrb[9].mxu0 }
 0x308   :  { %v543_v6 = vadd.f32 1e-06, %v542_v5  ;;  %v1215_v7 = vpop.f32.mrb[10].mxu0 }
 0x309   :  { %1368 = vrcp.f32 %v551_v4  ;;  %v554_v8 = vadd.f32 1e-06, %v1215_v7  ;;  %v545_v9 = vpop.f32.mrb[11].mxu0 }
 0x30a   :  { %1370 = vrcp.f32 %v543_v6  ;;  %v546_v10 = vadd.f32 1e-06, %v545_v9 }
 0x30b   :  { %1372 = vrcp.f32 %v554_v8 }
 0x30c   :  { %1374 = vrcp.f32 %v546_v10 }
 0x30e   :  { %v1218_v11 = vpop.f32.mrb[12].mxu0 }
 0x30f   :  { %v567_v12 = vadd.f32 1e-06, %v1218_v11  ;;  %v558_v13 = vpop.f32.mrb[13].mxu0 }
 0x310   :  { %v559_v14 = vadd.f32 1e-06, %v558_v13  ;;  %v1219_v15 = vpop.f32.mrb[14].mxu0 }
 0x311   :  { %1376 = vrcp.f32 %v567_v12  ;;  %v561_v16 = vpop.f32.mrb[15].mxu0 }
 0x312   :  { %1378 = vrcp.f32 %v559_v14  ;;  %v562_v18 = vadd.f32 1e-06, %v561_v16 }
 0x313   :  { %v1369_v19 = vpop.eup %1368 }
 0x314   :  { %v1371_v28 = vpop.eup %1370  ;;  %v588_v30 = vmul.f32 %v1369_v19, %v574_v17  ;;  %1380 = vrcp.f32 %v562_v18 }
 0x315   :  { %v1373_v31 = vpop.eup %1372  ;;  %v586_v33 = vmul.f32 %v1371_v28, %v572_v27 }
 0x316   :  { %v1375_v34 = vpop.eup %1374  ;;  %v589_v35 = vmul.f32 %v1373_v31, %v575_v29  ;;  %v1792_v36 = vmul.f32 %v1745_v55, %v588_v30 }
 0x317   :  { %v587_v37 = vmul.f32 %v1375_v34, %v573_v32  ;;  %v1795_v38 = vmul.f32 %v586_v33, %v1747_v56 }
 0x318   :  { %v594_v39 = vpack.c.bf16 %v589_v35, %v588_v30  ;;  %v1798_v40 = vmul.f32 %v1749_v57, %v589_v35 }
 0x319   :  { %v593_v41 = vpack.c.bf16 %v587_v37, %v586_v33  ;;  %v1801_v42 = vmul.f32 %v587_v37, %v1753_v59 }
 0x31b   :  { %v1377_v44 = vpop.eup %1376  ;;  %1236 = vmatprep.mubr.bf16.mxu1 %v593_v41 }
 0x31c   :  { %v1379_v46 = vpop.eup %1378  ;;  %1237 = vmatmul.mubr.bf16.vlgmr.msra.gmra.mrb[8].mxu1 %v594_v39  ;;  %v592_v47 = vmul.f32 %v1377_v44, %v578_v43 }
 0x31d   :  { %v590_v49 = vmul.f32 %v1379_v46, %v576_v45  ;;  %1269 = vmatpush3.bf16.msra.mxu1 %v1695_v20 }
 0x31e   :  { %v1381_v50 = vpop.eup %1380  ;;  %v1811_v51 = vmul.f32 %v1757_v61, %v592_v47  ;;  %1270 = vmatprep.subr.bf16.mxu1 %v1697_v21  ;;  %v596_v63 = vpack.c.bf16 %v592_v47, %v592_v47 }
 0x31f   :  { %v591_v52 = vmul.f32 %v1381_v50, %v577_v48  ;;  %v665_v53 = vmul.f32 %v590_v49, %v1760_v62 }
 0x321   :  { %v595_v58 = vpack.c.bf16 %v591_v52, %v590_v49  ;;  %v1816_v60 = vmul.f32 %v591_v52, %v1763_v0  ;;  %1271 = vmatpush3.bf16.msra.mxu1 %v1697_v21 }
 0x322   :  { %1272 = vmatprep.subr.bf16.mxu1 %v1703_v22 }
 0x323   :  { %1240 = vmatprep.mubr.bf16.mxu1 %v595_v58 }
 0x324   :  { %1241 = vmatmul.mubr.bf16.gmra.mrb[12].mxu1 %v596_v63 }
 0x325   :  { %1273 = vmatpush3.bf16.msra.mxu1 %v1703_v22 }
 0x326   :  { %1274 = vmatprep.subr.bf16.mxu1 %v1707_v23 }
 0x329   :  { %1275 = vmatpush3.bf16.msra.mxu1 %v1707_v23 }
 0x32a   :  { %1276 = vmatprep.subr.bf16.mxu1 %v1711_v24 }
 0x32d   :  { %1277 = vmatpush3.bf16.msra.mxu1 %v1711_v24 }
 0x32e   :  { %1278 = vmatprep.subr.bf16.mxu1 %v1715_v25 }
 0x331   :  { %1279 = vmatpush3.bf16.msra.mxu1 %v1715_v25 }
 0x332   :  { %1280 = vmatprep.subr.bf16.mxu1 %v1719_v26 }
 0x335   :  { %1281 = vmatpush3.bf16.msra.mxu1 %v1719_v26 }
 0x336   :  { %1282 = vmatprep.subr.bf16.mxu1 %v1737_v54 }
 0x339   :  { %1283 = vmatpush3.bf16.msra.mxu1 %v1737_v54 }
 0x33a   :  { %1316 = vmatprep.subr.bf16.mxu1 %v1695_v20 }
 0x3ef   :  { %v1238_v1 = vpop.f32.mrb[8].mxu1 }
 0x3f0   :  { %v640_v2 = vadd.f32 1e-06, %v1238_v1  ;;  %v631_v3 = vpop.f32.mrb[9].mxu1 }
 0x3f1   :  { %v632_v4 = vadd.f32 1e-06, %v631_v3  ;;  %v1239_v5 = vpop.f32.mrb[10].mxu1 }
 0x3f2   :  { %1382 = vrcp.f32 %v640_v2  ;;  %v643_v6 = vadd.f32 1e-06, %v1239_v5  ;;  %v634_v7 = vpop.f32.mrb[11].mxu1 }
 0x3f3   :  { %1384 = vrcp.f32 %v632_v4  ;;  %v635_v8 = vadd.f32 1e-06, %v634_v7 }
 0x3f4   :  { %1386 = vrcp.f32 %v643_v6 }
 0x3f5   :  { %1388 = vrcp.f32 %v635_v8 }
 0x3f7   :  { %v1242_v9 = vpop.f32.mrb[12].mxu1 }
 0x3f8   :  { %v656_v10 = vadd.f32 1e-06, %v1242_v9  ;;  %v647_v11 = vpop.f32.mrb[13].mxu1 }
 0x3f9   :  { %v648_v12 = vadd.f32 1e-06, %v647_v11  ;;  %v1243_v13 = vpop.f32.mrb[14].mxu1 }
 0x3fa   :  { %1390 = vrcp.f32 %v656_v10  ;;  %v650_v14 = vpop.f32.mrb[15].mxu1 }
 0x3fb   :  { %1392 = vrcp.f32 %v648_v12  ;;  %v651_v15 = vadd.f32 1e-06, %v650_v14 }
 0x3fc   :  { %v1383_v16 = vpop.eup %1382 }
 0x3fd   :  { %v1385_v17 = vpop.eup %1384  ;;  %v677_v18 = vmul.f32 %v1383_v16, %v1792_v36  ;;  %1394 = vrcp.f32 %v651_v15 }
 0x3fe   :  { %v1387_v19 = vpop.eup %1386  ;;  %v675_v27 = vmul.f32 %v1385_v17, %v1795_v38 }
 0x3ff   :  { %v1389_v28 = vpop.eup %1388  ;;  %v678_v29 = vmul.f32 %v1387_v19, %v1798_v40  ;;  %v752_v30 = vmul.f32 %v1745_v55, %v677_v18 }
 0x400   :  { %v676_v31 = vmul.f32 %v1389_v28, %v1801_v42  ;;  %v750_v32 = vmul.f32 %v675_v27, %v1747_v56 }
 0x401   :  { %v683_v33 = vpack.c.bf16 %v678_v29, %v677_v18  ;;  %v753_v34 = vmul.f32 %v1749_v57, %v678_v29 }
 0x402   :  { %v682_v35 = vpack.c.bf16 %v676_v31, %v675_v27  ;;  %v751_v37 = vmul.f32 %v676_v31, %v1753_v59 }
 0x404   :  { %v1391_v36 = vpop.eup %1390  ;;  %1260 = vmatprep.mubr.bf16.mxu0 %v682_v35 }
 0x405   :  { %v1393_v39 = vpop.eup %1392  ;;  %1261 = vmatmul.mubr.bf16.vlgmr.msra.gmra.mrb[16].mxu0 %v683_v33  ;;  %v681_v38 = vmul.f32 %v1391_v36, %v1811_v51 }
 0x406   :  { %v679_v41 = vmul.f32 %v1393_v39, %v665_v53  ;;  %1293 = vmatpush3.bf16.msra.mxu0 %v1695_v20 }
 0x407   :  { %v1395_v40 = vpop.eup %1394  ;;  %v756_v42 = vmul.f32 %v1757_v61, %v681_v38  ;;  %1294 = vmatprep.subr.bf16.mxu0 %v1697_v21  ;;  %v685_v47 = vpack.c.bf16 %v681_v38, %v681_v38 }
 0x408   :  { %v680_v43 = vmul.f32 %v1395_v40, %v1816_v60  ;;  %v754_v44 = vmul.f32 %v679_v41, %v1760_v62 }
 0x40a   :  { %v684_v45 = vpack.c.bf16 %v680_v43, %v679_v41  ;;  %v1847_v46 = vmul.f32 %v680_v43, %v1763_v0  ;;  %1295 = vmatpush3.bf16.msra.mxu0 %v1697_v21 }
 0x40b   :  { %1296 = vmatprep.subr.bf16.mxu0 %v1703_v22 }
 0x40c   :  { %1264 = vmatprep.mubr.bf16.mxu0 %v684_v45 }
 0x40d   :  { %1265 = vmatmul.mubr.bf16.gmra.mrb[20].mxu0 %v685_v47 }
 0x40e   :  { %1297 = vmatpush3.bf16.msra.mxu0 %v1703_v22 }
 0x40f   :  { %1298 = vmatprep.subr.bf16.mxu0 %v1707_v23 }
 0x412   :  { %1299 = vmatpush3.bf16.msra.mxu0 %v1707_v23 }
 0x413   :  { %1300 = vmatprep.subr.bf16.mxu0 %v1711_v24 }
 0x416   :  { %1301 = vmatpush3.bf16.msra.mxu0 %v1711_v24 }
 0x417   :  { %1302 = vmatprep.subr.bf16.mxu0 %v1715_v25 }
 0x41a   :  { %1303 = vmatpush3.bf16.msra.mxu0 %v1715_v25 }
 0x41b   :  { %1304 = vmatprep.subr.bf16.mxu0 %v1719_v26 }
 0x41e   :  { %1305 = vmatpush3.bf16.msra.mxu0 %v1719_v26 }
 0x41f   :  { %1306 = vmatprep.subr.bf16.mxu0 %v1737_v54 }
 0x422   :  { %1307 = vmatpush3.bf16.msra.mxu0 %v1737_v54 }
 0x4d8   :  { %v1262_v48 = vpop.f32.mrb[16].mxu0 }
 0x4d9   :  { %v729_v49 = vadd.f32 1e-06, %v1262_v48  ;;  %v720_v50 = vpop.f32.mrb[17].mxu0 }
 0x4da   :  { %v721_v51 = vadd.f32 1e-06, %v720_v50  ;;  %v1263_v52 = vpop.f32.mrb[18].mxu0 }
 0x4db   :  { %1396 = vrcp.f32 %v729_v49  ;;  %v732_v53 = vadd.f32 1e-06, %v1263_v52  ;;  %v723_v58 = vpop.f32.mrb[19].mxu0 }
 0x4dc   :  { %1398 = vrcp.f32 %v721_v51  ;;  %v724_v60 = vadd.f32 1e-06, %v723_v58 }
 0x4dd   :  { %1400 = vrcp.f32 %v732_v53 }
 0x4de   :  { %1402 = vrcp.f32 %v724_v60 }
 0x4e0   :  { %v1266_v63 = vpop.f32.mrb[20].mxu0 }
 0x4e1   :  { %v745_v1 = vadd.f32 1e-06, %v1266_v63  ;;  %v736_v2 = vpop.f32.mrb[21].mxu0 }
 0x4e2   :  { %v737_v3 = vadd.f32 1e-06, %v736_v2  ;;  %v1267_v4 = vpop.f32.mrb[22].mxu0 }
 0x4e3   :  { %1404 = vrcp.f32 %v745_v1  ;;  %v739_v5 = vpop.f32.mrb[23].mxu0 }
 0x4e4   :  { %1406 = vrcp.f32 %v737_v3  ;;  %v740_v6 = vadd.f32 1e-06, %v739_v5 }
 0x4e5   :  { %v1397_v7 = vpop.eup %1396 }
 0x4e6   :  { %v1399_v8 = vpop.eup %1398  ;;  %v766_v9 = vmul.f32 %v1397_v7, %v752_v30  ;;  %1408 = vrcp.f32 %v740_v6 }
 0x4e7   :  { %v1401_v10 = vpop.eup %1400  ;;  %v764_v11 = vmul.f32 %v1399_v8, %v750_v32 }
 0x4e8   :  { %v1403_v12 = vpop.eup %1402  ;;  %v767_v13 = vmul.f32 %v1401_v10, %v753_v34  ;;  %v841_v14 = vmul.f32 %v1745_v55, %v766_v9 }
 0x4e9   :  { %v765_v15 = vmul.f32 %v1403_v12, %v751_v37  ;;  %v839_v16 = vmul.f32 %v764_v11, %v1747_v56 }
 0x4ea   :  { %v772_v17 = vpack.c.bf16 %v767_v13, %v766_v9  ;;  %v842_v18 = vmul.f32 %v1749_v57, %v767_v13 }
 0x4eb   :  { %v771_v19 = vpack.c.bf16 %v765_v15, %v764_v11  ;;  %v840_v27 = vmul.f32 %v765_v15, %v1753_v59 }
 0x4ed   :  { %v1405_v28 = vpop.eup %1404  ;;  %1284 = vmatprep.mubr.bf16.mxu1 %v771_v19 }
 0x4ee   :  { %v1407_v29 = vpop.eup %1406  ;;  %1285 = vmatmul.mubr.bf16.vlgmr.msra.gmra.mrb[16].mxu1 %v772_v17  ;;  %v770_v30 = vmul.f32 %v1405_v28, %v756_v42 }
 0x4ef   :  { %v768_v31 = vmul.f32 %v1407_v29, %v754_v44  ;;  %1324 = vmatpush3.bf16.msra.mxu1 %v1695_v20 }
 0x4f0   :  { %v1409_v32 = vpop.eup %1408  ;;  %v845_v33 = vmul.f32 %v1757_v61, %v770_v30  ;;  %1317 = vmatprep.subr.bf16.mxu1 %v1697_v21  ;;  %v774_v39 = vpack.c.bf16 %v770_v30, %v770_v30 }
 0x4f1   :  { %v769_v34 = vmul.f32 %v1409_v32, %v1847_v46  ;;  %v843_v35 = vmul.f32 %v768_v31, %v1760_v62 }
 0x4f3   :  { %v773_v37 = vpack.c.bf16 %v769_v34, %v768_v31  ;;  %1325 = vmatpush3.bf16.msra.mxu1 %v1697_v21  ;;  %v844_v36 = vmul.f32 %v769_v34, %v1763_v0 }
 0x4f4   :  { %1318 = vmatprep.subr.bf16.mxu1 %v1703_v22 }
 0x4f5   :  { %1288 = vmatprep.mubr.bf16.mxu1 %v773_v37 }
 0x4f6   :  { %1289 = vmatmul.mubr.bf16.gmra.mrb[20].mxu1 %v774_v39 }
 0x4f7   :  { %1326 = vmatpush3.bf16.msra.mxu1 %v1703_v22 }
 0x4f8   :  { %1319 = vmatprep.subr.bf16.mxu1 %v1707_v23 }
 0x4fb   :  { %1327 = vmatpush3.bf16.msra.mxu1 %v1707_v23 }
 0x4fc   :  { %1320 = vmatprep.subr.bf16.mxu1 %v1711_v24 }
 0x4ff   :  { %1328 = vmatpush3.bf16.msra.mxu1 %v1711_v24 }
 0x500   :  { %1321 = vmatprep.subr.bf16.mxu1 %v1715_v25 }
 0x503   :  { %1329 = vmatpush3.bf16.msra.mxu1 %v1715_v25 }
 0x504   :  { %1322 = vmatprep.subr.bf16.mxu1 %v1719_v26 }
 0x507   :  { %1330 = vmatpush3.bf16.msra.mxu1 %v1719_v26 }
 0x508   :  { %1323 = vmatprep.subr.bf16.mxu1 %v1737_v54 }
 0x50b   :  { %1331 = vmatpush3.bf16.msra.mxu1 %v1737_v54 }
 0x5c1   :  { %v1286_v20 = vpop.f32.mrb[16].mxu1 }
 0x5c2   :  { %v818_v21 = vadd.f32 1e-06, %v1286_v20  ;;  %v809_v22 = vpop.f32.mrb[17].mxu1 }
 0x5c3   :  { %v810_v23 = vadd.f32 1e-06, %v809_v22  ;;  %v1287_v38 = vpop.f32.mrb[18].mxu1 }
 0x5c4   :  { %1410 = vrcp.f32 %v818_v21  ;;  %v821_v41 = vadd.f32 1e-06, %v1287_v38  ;;  %v812_v24 = vpop.f32.mrb[19].mxu1 }
 0x5c5   :  { %1412 = vrcp.f32 %v810_v23  ;;  %v813_v40 = vadd.f32 1e-06, %v812_v24 }
 0x5c6   :  { %1414 = vrcp.f32 %v821_v41 }
 0x5c7   :  { %1416 = vrcp.f32 %v813_v40 }
 0x5c9   :  { %v1290_v25 = vpop.f32.mrb[20].mxu1 }
 0x5ca   :  { %v834_v42 = vadd.f32 1e-06, %v1290_v25  ;;  %v825_v43 = vpop.f32.mrb[21].mxu1 }
 0x5cb   :  { %v826_v26 = vadd.f32 1e-06, %v825_v43  ;;  %v1291_v44 = vpop.f32.mrb[22].mxu1 }
 0x5cc   :  { %1418 = vrcp.f32 %v834_v42  ;;  %v828_v45 = vpop.f32.mrb[23].mxu1 }
 0x5cd   :  { %1420 = vrcp.f32 %v826_v26  ;;  %v829_v54 = vadd.f32 1e-06, %v828_v45 }
 0x5ce   :  { %v1411_v46 = vpop.eup %1410 }
 0x5cf   :  { %v1413_v47 = vpop.eup %1412  ;;  %v855_v48 = vmul.f32 %v1411_v46, %v841_v14  ;;  %1422 = vrcp.f32 %v829_v54 }
 0x5d0   :  { %v1415_v49 = vpop.eup %1414  ;;  %v853_v50 = vmul.f32 %v1413_v47, %v839_v16 }
 0x5d1   :  { %v1417_v51 = vpop.eup %1416  ;;  %v856_v52 = vmul.f32 %v1415_v49, %v842_v18  ;;  %v930_v53 = vmul.f32 %v1745_v55, %v855_v48 }
 0x5d2   :  { %v854_v58 = vmul.f32 %v1417_v51, %v840_v27  ;;  %v928_v60 = vmul.f32 %v853_v50, %v1747_v56 }
 0x5d3   :  { %v861_v63 = vpack.c.bf16 %v856_v52, %v855_v48  ;;  %v931_v1 = vmul.f32 %v1749_v57, %v856_v52 }
 0x5d4   :  { %v860_v2 = vpack.c.bf16 %v854_v58, %v853_v50  ;;  %v929_v3 = vmul.f32 %v854_v58, %v1753_v59 }
 0x5d6   :  { %v1419_v4 = vpop.eup %1418  ;;  %1308 = vmatprep.mubr.bf16.mxu0 %v860_v2 }
 0x5d7   :  { %v1421_v5 = vpop.eup %1420  ;;  %v859_v6 = vmul.f32 %v1419_v4, %v845_v33  ;;  %1309 = vmatmul.mubr.bf16.vlgmr.msra.gmra.mrb[24].mxu0 %v861_v63 }
 0x5d8   :  { %v857_v7 = vmul.f32 %v1421_v5, %v843_v35 }
 0x5d9   :  { %v1423_v8 = vpop.eup %1422  ;;  %v934_v9 = vmul.f32 %v1757_v61, %v859_v6  ;;  %v863_v12 = vpack.c.bf16 %v859_v6, %v859_v6 }
 0x5da   :  { %v858_v10 = vmul.f32 %v1423_v8, %v844_v36  ;;  %v932_v55 = vmul.f32 %v857_v7, %v1760_v62 }
 0x5dc   :  { %v862_v11 = vpack.c.bf16 %v858_v10, %v857_v7  ;;  %v933_v56 = vmul.f32 %v858_v10, %v1763_v0 }
 0x5de   :  { %1312 = vmatprep.mubr.bf16.mxu1 %v862_v11 }
 0x5df   :  { %1313 = vmatmul.mubr.bf16.vlgmr.msra.gmra.mrb[24].mxu1 %v863_v12 }
 0x6aa   :  { %v1310_v57 = vpop.f32.mrb[24].mxu0 }
 0x6ab   :  { %v907_v59 = vadd.f32 1e-06, %v1310_v57  ;;  %v898_v13 = vpop.f32.mrb[25].mxu0 }
 0x6ac   :  { %v899_v14 = vadd.f32 1e-06, %v898_v13  ;;  %v1311_v15 = vpop.f32.mrb[26].mxu0 }
 0x6ad   :  { %1424 = vrcp.f32 %v907_v59  ;;  %v910_v16 = vadd.f32 1e-06, %v1311_v15  ;;  %v901_v17 = vpop.f32.mrb[27].mxu0 }
 0x6ae   :  { %1426 = vrcp.f32 %v899_v14  ;;  %v902_v18 = vadd.f32 1e-06, %v901_v17 }
 0x6af   :  { %1428 = vrcp.f32 %v910_v16 }
 0x6b0   :  { %1430 = vrcp.f32 %v902_v18 }
 0x6b2   :  { %v1314_v61 = vpop.f32.mrb[24].mxu1 }
 0x6b3   :  { %v923_v62 = vadd.f32 1e-06, %v1314_v61  ;;  %v914_v19 = vpop.f32.mrb[25].mxu1 }
 0x6b4   :  { %v915_v27 = vadd.f32 1e-06, %v914_v19  ;;  %v1315_v0 = vpop.f32.mrb[26].mxu1 }
 0x6b5   :  { %1432 = vrcp.f32 %v923_v62  ;;  %v917_v28 = vpop.f32.mrb[27].mxu1 }
 0x6b6   :  { %1434 = vrcp.f32 %v915_v27  ;;  %v918_v29 = vadd.f32 1e-06, %v917_v28 }
 0x6b7   :  { %v1425_v30 = vpop.eup %1424 }
 0x6b8   :  { %v1427_v31 = vpop.eup %1426  ;;  %v944_v32 = vmul.f32 %v1425_v30, %v930_v53  ;;  %1436 = vrcp.f32 %v918_v29 }
 0x6b9   :  { %v1429_v33 = vpop.eup %1428  ;;  %v942_v34 = vmul.f32 %v1427_v31, %v928_v60 }
 0x6ba   :  { %v1431_v35 = vpop.eup %1430  ;;  %v945_v37 = vmul.f32 %v1429_v33, %v931_v1 }
 0x6bb   :  { %v943_v36 = vmul.f32 %v1431_v35, %v929_v3 }
 0x6bc   :  { %v1055_v39 = vpack.c.bf16 %v945_v37, %v944_v32 }
 0x6bd   :  { %v1050_v20 = vpack.c.bf16 %v943_v36, %v942_v34 }
 0x6be   :  { %1062 = vst [vmem:[#allocation12 + $0x8] sm:$0xff] %v1055_v39  }
 0x6bf   :  { %v1433_v21 = vpop.eup %1432  ;;  %1051 = vst [vmem:[#allocation12] sm:$0xff] %v1050_v20  }
 0x6c0   :  { %v1435_v22 = vpop.eup %1434  ;;  %v948_v23 = vmul.f32 %v1433_v21, %v934_v9 }
 0x6c1   :  { %v946_v38 = vmul.f32 %v1435_v22, %v932_v55 }
 0x6c2   :  { %v1437_v41 = vpop.eup %1436  ;;  %v1046_v24 = vpack.c.bf16 %v948_v23, %v948_v23 }
 0x6c3   :  { %v947_v40 = vmul.f32 %v1437_v41, %v933_v56 }
 0x6c4   :  { %984 = vst [vmem:[#allocation12 + $0x18] sm:$0xf] %v1046_v24 }
 0x6c5   :  { %v1060_v25 = vpack.c.bf16 %v947_v40, %v946_v38 }
 0x6c7   :  { %1063 = vst [vmem:[#allocation12 + $0x10] sm:$0xff] %v1060_v25  }
 0x6c8   :  { %1559 = shalt.err (!%p1556_p2)
}
 0x6c9   :  { %s1560_s8 = scalar_lea.hbm %s1912_s5, 448 }
 0x6ca   :  { %p1561_p3 = scmp.ne.s32.totalorder %s1912_s5, %s1560_s8  ;;  %p1564_p4 = scmp.lt.u32.totalorder %s1560_s8, %s1912_s5 }
 0x6cc   :  { %p1566_p5 = pnand %p1564_p4, %p1561_p3 }
 0x6ce   :  { %1569 = shalt.err (!%p1566_p5)
}
 0x6cf   :  { %996 = dma.vmem_to_hbm [thread:$0]  %s991_s29, 448, %s1912_s5, [#allocation5], %s1580_s30, %s1580_s30, %s1581_s6  }
 0x6d0   :  { %1576 = dma.done.wait [#allocation5], 448  }
 0x6d1   :  { %1577 = vsyncadd [#allocation5], 4294966848 }
 0x6d2   :  { %1000 = vsyncpa [#allocation4], 1 }
 0x6d3   :  { %1001 = vsyncpa [#allocation7], 1 }
 0x6d4   :  { %1002 = vsyncpa [#allocation10], 1 }
 0x6d5   :  { %1003 = vsyncpa [#allocation5], 1 }

</bundles_post_ra>
